<compile_context>
chip_gen: v5e
topology: v5e:2x2
jax: 0.10.0
libtpu: 0.0.40
codegen_flags: <defaults>
</compile_context>

<pallas_src>
import functools

import jax
import jax.numpy as jnp
from jax.experimental import pallas as pl
from jax.experimental.pallas import tpu as pltpu

IN_FEATURES = 15
OUT_FEATURES = 50

# Contract the last (feature) axis of both operands: "A @ B^T" MXU form (flash-attn pattern).
_NT_DIMS = (((1,), (1,)), ((), ()))


def fc1_kernel(x_ref, w_ref, b_ref, o_ref):
    # x_ref: [BN, 15]   w_ref: [50, 15]   b_ref: [50, 1]   o_ref: [1, BN]
    # Linear in transposed form: logits[50, BN] = W @ x^T + b   (MXU, K=15)
    logits = jax.lax.dot_general(
        w_ref[...], x_ref[...], _NT_DIMS, preferred_element_type=jnp.float32
    ) + b_ref[...]
    # Max over the 50 output features (sublane axis) -> [1, BN]   (XLU)
    m = jnp.max(logits, axis=0, keepdims=True)
    # Sigmoid AFTER the max (monotonic => identical result); 1 exp per row, not 50   (EUP)
    o_ref[...] = 1.0 / (1.0 + jnp.exp(-m))


def _round_up(v, m):
    return ((v + m - 1) // m) * m


@functools.partial(jax.jit, static_argnames=("block_n",))
def fc1_forward(x, w, b, *, block_n=4096):
    """x: [N, 1, 15], w: [50, 15] (PyTorch [out, in] orientation), b: [50] -> [N]."""
    n = x.shape[0]
    out_f, in_f = w.shape

    x2d = x.reshape(n, in_f).astype(jnp.float32)
    w2d = w.astype(jnp.float32)
    b2d = b.reshape(out_f, 1).astype(jnp.float32)

    # Batch tile: multiple of 128 (lane-dense output block), capped at block_n.
    bn = max(128, min(_round_up(block_n, 128), _round_up(n, 128)))
    n_pad = _round_up(n, bn)
    if n_pad != n:
        x2d = jnp.pad(x2d, ((0, n_pad - n), (0, 0)))  # zero rows, sliced off below

    out = pl.pallas_call(
        fc1_kernel,
        out_shape=jax.ShapeDtypeStruct((1, n_pad), jnp.float32),
        grid=(pl.cdiv(n_pad, bn),),
        in_specs=[
            pl.BlockSpec((bn, in_f), lambda i: (i, 0)),      # x tile: pipelined over batch
            pl.BlockSpec((out_f, in_f), lambda i: (0, 0)),   # weight: VMEM-resident
            pl.BlockSpec((out_f, 1), lambda i: (0, 0)),      # bias:   VMEM-resident
        ],
        out_specs=pl.BlockSpec((1, bn), lambda i: (0, i)),   # lane-dense output row
        compiler_params=pltpu.CompilerParams(
            dimension_semantics=("parallel",),               # megacore sharding on v7x
        ),
    )(x2d, w2d, b2d)

    return out[0, :n]  # == torch.max(...).reshape(-1)


def init_params(key):
    """Deterministic init mimicking nn.Linear(15, 50) default (uniform +/- 1/sqrt(fan_in))."""
    k_w, k_b = jax.random.split(key)
    bound = 1.0 / jnp.sqrt(float(IN_FEATURES))
    # PyTorch orientation [out_features, in_features] = [50, 15].
    w = jax.random.uniform(k_w, (OUT_FEATURES, IN_FEATURES), jnp.float32, -bound, bound)
    b = jax.random.uniform(k_b, (OUT_FEATURES,), jnp.float32, -bound, bound)
    return w, b


if __name__ == "__main__":
    key = jax.random.PRNGKey(0)
    k_x, k_x2, k_p = jax.random.split(key, 3)

    w, b = init_params(k_p)

    # Small shape matching the module spec: [N, 1, 15]
    N = 2
    x = jax.random.normal(k_x, (N, 1, 15), dtype=jnp.float32)
    out = jax.block_until_ready(fc1_forward(x, w, b))
    ref = jnp.max(jax.nn.sigmoid(x.reshape(N, IN_FEATURES) @ w.T + b), axis=-1)
    assert out.shape == (N,)
    assert jnp.allclose(out, ref, atol=1e-5), (out, ref)

    # Exercise the multi-step grid + padding path (3 grid steps of BN=128, N not a multiple).
    N2 = 300
    x2 = jax.random.normal(k_x2, (N2, 1, 15), dtype=jnp.float32)
    out2 = jax.block_until_ready(fc1_forward(x2, w, b, block_n=128))
    ref2 = jnp.max(jax.nn.sigmoid(x2.reshape(N2, IN_FEATURES) @ w.T + b), axis=-1)
    assert out2.shape == (N2,)
    assert jnp.allclose(out2, ref2, atol=1e-5), (out2, ref2)

    print("KERNEL_OK")
</pallas_src>

<mosaic_0001>
module attributes {stable_mosaic.version = 11 : i64} {
  func.func @fc1_kernel(%arg0: i32, %arg1: memref<128x15xf32, #tpu.memory_space<vmem>>, %arg2: memref<50x15xf32, #tpu.memory_space<vmem>>, %arg3: memref<50x1xf32, #tpu.memory_space<vmem>>, %arg4: memref<1x128xf32, #tpu.memory_space<vmem>>) attributes {dimension_semantics = [#tpu.dimension_semantics<parallel>], iteration_bounds = array<i64: 1>, scalar_prefetch = 0 : i64, scratch_operands = 0 : i64, tpu.core_type = #tpu.core_type<tc>, window_params = [{transform_indices = @transform_0, window_bounds = array<i64: 128, 15>}, {pipeline_mode = #tpu.pipeline_mode<synchronous>, transform_indices = @transform_1, window_bounds = array<i64: 50, 15>}, {pipeline_mode = #tpu.pipeline_mode<synchronous>, transform_indices = @transform_2, window_bounds = array<i64: 50, 1>}, {transform_indices = @transform_3, window_bounds = array<i64: 1, 128>}]} {
    %c0 = arith.constant 0 : index
    %c0_0 = arith.constant 0 : index
    %0 = vector.load %arg2[%c0, %c0_0] : memref<50x15xf32, #tpu.memory_space<vmem>>, vector<50x15xf32>
    %c0_1 = arith.constant 0 : index
    %c0_2 = arith.constant 0 : index
    %1 = vector.load %arg1[%c0_1, %c0_2] : memref<128x15xf32, #tpu.memory_space<vmem>>, vector<128x15xf32>
    %cst = arith.constant dense<0.000000e+00> : vector<50x128xf32>
    %2 = tpu.matmul %0, %1, %cst {dimension_numbers = #tpu.dot_dimension_numbers<[1], [1], [0], [0], [0, 0, 1, 0], [], []>} : vector<50x15xf32>, vector<128x15xf32>, vector<50x128xf32> -> vector<50x128xf32>
    %c0_3 = arith.constant 0 : index
    %c0_4 = arith.constant 0 : index
    %3 = vector.load %arg3[%c0_3, %c0_4] : memref<50x1xf32, #tpu.memory_space<vmem>>, vector<50x1xf32>
    %4 = vector.broadcast %3 : vector<50x1xf32> to vector<50x128xf32>
    %5 = arith.addf %2, %4 : vector<50x128xf32>
    %cst_5 = arith.constant dense<0xFF800000> : vector<128xf32>
    %6 = vector.multi_reduction <maximumf>, %5, %cst_5 [0] : vector<50x128xf32> to vector<128xf32>
    %7 = vector.shape_cast %6 : vector<128xf32> to vector<1x128xf32>
    %cst_6 = arith.constant 0.000000e+00 : f32
    %8 = vector.broadcast %cst_6 : f32 to vector<1x128xf32>
    %9 = arith.subf %8, %7 : vector<1x128xf32>
    %10 = math.exp %9 : vector<1x128xf32>
    %cst_7 = arith.constant 1.000000e+00 : f32
    %11 = vector.broadcast %cst_7 : f32 to vector<1x128xf32>
    %12 = arith.addf %11, %10 : vector<1x128xf32>
    %cst_8 = arith.constant 1.000000e+00 : f32
    %13 = vector.broadcast %cst_8 : f32 to vector<1x128xf32>
    %14 = arith.divf %13, %12 : vector<1x128xf32>
    %c0_9 = arith.constant 0 : index
    %c0_10 = arith.constant 0 : index
    %15 = vector.load %arg4[%c0_9, %c0_10] : memref<1x128xf32, #tpu.memory_space<vmem>>, vector<1x128xf32>
    tpu.vector_store %arg4[%c0_9, %c0_10], %14 {strides = array<i32>} : memref<1x128xf32, #tpu.memory_space<vmem>>, vector<1x128xf32>,
    return
  }
  func.func @transform_0(%arg0: i32) -> (i32, i32) {
    %c0_i32 = arith.constant 0 : i32
    %c0_i32_0 = arith.constant 0 : i32
    return %arg0, %c0_i32 : i32, i32
  }
  func.func @transform_1(%arg0: i32) -> (i32, i32) {
    %c0_i32 = arith.constant 0 : i32
    %c0_i32_0 = arith.constant 0 : i32
    %c0_i32_1 = arith.constant 0 : i32
    return %c0_i32, %c0_i32_0 : i32, i32
  }
  func.func @transform_2(%arg0: i32) -> (i32, i32) {
    %c0_i32 = arith.constant 0 : i32
    %c0_i32_0 = arith.constant 0 : i32
    %c0_i32_1 = arith.constant 0 : i32
    return %c0_i32, %c0_i32_0 : i32, i32
  }
  func.func @transform_3(%arg0: i32) -> (i32, i32) {
    %c0_i32 = arith.constant 0 : i32
    %c0_i32_0 = arith.constant 0 : i32
    return %c0_i32, %arg0 : i32, i32
  }
}

</mosaic_0001>

<bundles_post_ra>
// kernel: fc1_forward.1
= control target key start
LH: loop header
LB: loop body
LE: loop exit
PB: predicated region body
PF: predicated region fallthrough
CT: control target
= control target key end

     0   :  { %vm79_vm0 = vcmask 121856   ;;  %v304_v9 = vmov 0   ;;  %vm189_vm1 = vcmask 1041408   ;;  %s489_s0 = inlined_call_operand.vmem [shape: f32[128,15], index: 0, kind: input, shape index: {}]   ;;  %s490_s2 = inlined_call_operand.vmem [shape: f32[50,1], index: 2, kind: input, shape index: {}]   ;;  %s491_s1 = inlined_call_operand.vmem [shape: f32[50,15], index: 1, kind: input, shape index: {}]   ;;  %s492_s3 = inlined_call_operand.vmem [shape: f32[1,128], index: 3, kind: output, shape index: {}]  }
   0x1   :  { %v36_v0 = vld [vmem:[%s489_s0 + $0x78] sm:$0xff]  ;;  %v35_v1 = vld [vmem:[%s489_s0 + $0x70] sm:$0xff]  ;;  %v34_v2 = vld [vmem:[%s489_s0 + $0x68] sm:$0xff]  ;;  %297 = vset.pattern.permute.xlu0 %v304_v9  ;;  %298 = vset.pattern.permute.xlu1 %v304_v9 }
   0x2   :  { %225 = vmatpush.xpose.msk.msra.mxu0 %vm79_vm0, %v36_v0  ;;  %249 = vmatpush.xpose.msk.msra.mxu2 %vm79_vm0, %v36_v0  ;;  %v33_v3 = vld [vmem:[%s489_s0 + $0x60] sm:$0xff]  ;;  %v32_v4 = vld [vmem:[%s489_s0 + $0x58] sm:$0xff]  ;;  %v31_v5 = vld [vmem:[%s489_s0 + $0x50] sm:$0xff] }
   0x3   :  { %250 = vmatpush.xpose.msk.msra.mxu3 %vm79_vm0, %v36_v0  ;;  %248 = vmatpush.xpose.msk.msra.mxu1 %vm79_vm0, %v36_v0  ;;  %v30_v6 = vld [vmem:[%s489_s0 + $0x48] sm:$0xff]  ;;  %v29_v7 = vld [vmem:[%s489_s0 + $0x40] sm:$0xff]  ;;  %v43_v8 = vld [vmem:[%s490_s2 + $0x30] sm:$0x3] }
   0x4   :  { %76 = vperm.xlu0 %297, %v43_v8   ;;  %299 = vset.pattern.permute.xlu2 %v304_v9  ;;  %v28_v10 = vld [vmem:[%s489_s0 + $0x38] sm:$0xff]  ;;  %v37_v11 = vld [vmem:[%s490_s2] sm:$0xff]  ;;  %v27_v12 = vld [vmem:[%s489_s0 + $0x30] sm:$0xff] }
   0x5   :  { %v26_v13 = vld [vmem:[%s489_s0 + $0x28] sm:$0xff]  ;;  %v40_v15 = vld [vmem:[%s490_s2 + $0x18] sm:$0xff]  ;;  %v25_v16 = vld [vmem:[%s489_s0 + $0x20] sm:$0xff] }
   0x6   :  { %226 = vmatpush.xpose.msk.msra.mxu0 %vm79_vm0, %v35_v1  ;;  %252 = vmatpush.xpose.msk.msra.mxu2 %vm79_vm0, %v35_v1  ;;  %v38_v14 = vld [vmem:[%s490_s2 + $0x8] sm:$0xff]  ;;  %v41_v17 = vld [vmem:[%s490_s2 + $0x20] sm:$0xff]  ;;  %v24_v18 = vld [vmem:[%s489_s0 + $0x18] sm:$0xff] }
   0x7   :  { %253 = vmatpush.xpose.msk.msra.mxu3 %vm79_vm0, %v35_v1  ;;  %251 = vmatpush.xpose.msk.msra.mxu1 %vm79_vm0, %v35_v1  ;;  %v39_v19 = vld [vmem:[%s490_s2 + $0x10] sm:$0xff]  ;;  %v42_v20 = vld [vmem:[%s490_s2 + $0x28] sm:$0xff]  ;;  %v21_v23 = vld [vmem:[%s489_s0] sm:$0xff] }
   0x8   :  { %51 = vperm.xlu1 %298, %v38_v14   ;;  %66 = vperm.xlu2 %299, %v41_v17   ;;  %v23_v21 = vld [vmem:[%s489_s0 + $0x10] sm:$0xff]  ;;  %v22_v22 = vld [vmem:[%s489_s0 + $0x8] sm:$0xff]  ;;  %v14_v24 = vld [vmem:[%s491_s1] sm:$0xff] }
   0x9   :  { %v17_v25 = vld [vmem:[%s491_s1 + $0x18] sm:$0xff]  ;;  %v19_v26 = vld [vmem:[%s491_s1 + $0x28] sm:$0xff]  ;;  %v16_v27 = vld [vmem:[%s491_s1 + $0x10] sm:$0xff] }
   0xa   :  { %227 = vmatpush.xpose.msk.msra.mxu0 %vm79_vm0, %v34_v2  ;;  %255 = vmatpush.xpose.msk.msra.mxu2 %vm79_vm0, %v34_v2  ;;  %v15_v28 = vld [vmem:[%s491_s1 + $0x8] sm:$0xff]  ;;  %v18_v29 = vld [vmem:[%s491_s1 + $0x20] sm:$0xff]  ;;  %v20_v30 = vld [vmem:[%s491_s1 + $0x30] sm:$0x3] }
   0xb   :  { %256 = vmatpush.xpose.msk.msra.mxu3 %vm79_vm0, %v34_v2  ;;  %254 = vmatpush.xpose.msk.msra.mxu1 %vm79_vm0, %v34_v2 }
   0xc   :  { %46 = vperm.xlu0 %297, %v37_v11  }
   0xe   :  { %228 = vmatpush.xpose.msk.msra.mxu0 %vm79_vm0, %v33_v3  ;;  %258 = vmatpush.xpose.msk.msra.mxu2 %vm79_vm0, %v33_v3 }
   0xf   :  { %259 = vmatpush.xpose.msk.msra.mxu3 %vm79_vm0, %v33_v3  ;;  %257 = vmatpush.xpose.msk.msra.mxu1 %vm79_vm0, %v33_v3 }
  0x10   :  { %56 = vperm.xlu1 %298, %v39_v19   ;;  %71 = vperm.xlu2 %299, %v42_v20  }
  0x12   :  { %229 = vmatpush.xpose.msk.msra.mxu0 %vm79_vm0, %v32_v4  ;;  %261 = vmatpush.xpose.msk.msra.mxu2 %vm79_vm0, %v32_v4 }
  0x13   :  { %262 = vmatpush.xpose.msk.msra.mxu3 %vm79_vm0, %v32_v4  ;;  %260 = vmatpush.xpose.msk.msra.mxu1 %vm79_vm0, %v32_v4 }
  0x14   :  { %61 = vperm.xlu0 %297, %v40_v15  }
  0x16   :  { %230 = vmatpush.xpose.msk.msra.mxu0 %vm79_vm0, %v31_v5  ;;  %264 = vmatpush.xpose.msk.msra.mxu2 %vm79_vm0, %v31_v5 }
  0x17   :  { %265 = vmatpush.xpose.msk.msra.mxu3 %vm79_vm0, %v31_v5  ;;  %263 = vmatpush.xpose.msk.msra.mxu1 %vm79_vm0, %v31_v5 }
  0x1a   :  { %231 = vmatpush.xpose.msk.msra.mxu0 %vm79_vm0, %v30_v6  ;;  %267 = vmatpush.xpose.msk.msra.mxu2 %vm79_vm0, %v30_v6 }
  0x1b   :  { %268 = vmatpush.xpose.msk.msra.mxu3 %vm79_vm0, %v30_v6  ;;  %266 = vmatpush.xpose.msk.msra.mxu1 %vm79_vm0, %v30_v6 }
  0x1e   :  { %232 = vmatpush.xpose.msk.msra.mxu0 %vm79_vm0, %v29_v7  ;;  %270 = vmatpush.xpose.msk.msra.mxu2 %vm79_vm0, %v29_v7 }
  0x1f   :  { %271 = vmatpush.xpose.msk.msra.mxu3 %vm79_vm0, %v29_v7  ;;  %269 = vmatpush.xpose.msk.msra.mxu1 %vm79_vm0, %v29_v7 }
  0x22   :  { %233 = vmatpush.xpose.msk.msra.mxu0 %vm79_vm0, %v28_v10  ;;  %273 = vmatpush.xpose.msk.msra.mxu2 %vm79_vm0, %v28_v10 }
  0x23   :  { %274 = vmatpush.xpose.msk.msra.mxu3 %vm79_vm0, %v28_v10  ;;  %272 = vmatpush.xpose.msk.msra.mxu1 %vm79_vm0, %v28_v10 }
  0x26   :  { %234 = vmatpush.xpose.msk.msra.mxu0 %vm79_vm0, %v27_v12  ;;  %276 = vmatpush.xpose.msk.msra.mxu2 %vm79_vm0, %v27_v12 }
  0x27   :  { %277 = vmatpush.xpose.msk.msra.mxu3 %vm79_vm0, %v27_v12  ;;  %275 = vmatpush.xpose.msk.msra.mxu1 %vm79_vm0, %v27_v12 }
  0x2a   :  { %235 = vmatpush.xpose.msk.msra.mxu0 %vm79_vm0, %v26_v13  ;;  %279 = vmatpush.xpose.msk.msra.mxu2 %vm79_vm0, %v26_v13 }
  0x2b   :  { %280 = vmatpush.xpose.msk.msra.mxu3 %vm79_vm0, %v26_v13  ;;  %278 = vmatpush.xpose.msk.msra.mxu1 %vm79_vm0, %v26_v13 }
  0x2e   :  { %236 = vmatpush.xpose.msk.msra.mxu0 %vm79_vm0, %v25_v16  ;;  %282 = vmatpush.xpose.msk.msra.mxu2 %vm79_vm0, %v25_v16 }
  0x2f   :  { %283 = vmatpush.xpose.msk.msra.mxu3 %vm79_vm0, %v25_v16  ;;  %281 = vmatpush.xpose.msk.msra.mxu1 %vm79_vm0, %v25_v16 }
  0x32   :  { %237 = vmatpush.xpose.msk.msra.mxu0 %vm79_vm0, %v24_v18  ;;  %285 = vmatpush.xpose.msk.msra.mxu2 %vm79_vm0, %v24_v18 }
  0x33   :  { %286 = vmatpush.xpose.msk.msra.mxu3 %vm79_vm0, %v24_v18  ;;  %284 = vmatpush.xpose.msk.msra.mxu1 %vm79_vm0, %v24_v18 }
  0x36   :  { %238 = vmatpush.xpose.msk.msra.mxu0 %vm79_vm0, %v23_v21  ;;  %288 = vmatpush.xpose.msk.msra.mxu2 %vm79_vm0, %v23_v21 }
  0x37   :  { %289 = vmatpush.xpose.msk.msra.mxu3 %vm79_vm0, %v23_v21  ;;  %287 = vmatpush.xpose.msk.msra.mxu1 %vm79_vm0, %v23_v21 }
  0x3a   :  { %239 = vmatpush.xpose.msk.msra.mxu0 %vm79_vm0, %v22_v22  ;;  %291 = vmatpush.xpose.msk.msra.mxu2 %vm79_vm0, %v22_v22 }
  0x3b   :  { %292 = vmatpush.xpose.msk.msra.mxu3 %vm79_vm0, %v22_v22  ;;  %290 = vmatpush.xpose.msk.msra.mxu1 %vm79_vm0, %v22_v22 }
  0x3e   :  { %240 = vmatpush.xpose.msk.msra.mxu0 %vm79_vm0, %v21_v23  ;;  %294 = vmatpush.xpose.msk.msra.mxu2 %vm79_vm0, %v21_v23 }
  0x3f   :  { %295 = vmatpush.xpose.msk.msra.mxu3 %vm79_vm0, %v21_v23  ;;  %293 = vmatpush.xpose.msk.msra.mxu1 %vm79_vm0, %v21_v23 }
  0x41   :  { %241 = vmatmul.msk.f32.vlgmr.msra.gmra.mxu0 %vm79_vm0, %v14_v24  ;;  %244 = vmatmul.msk.f32.vlgmr.msra.gmra.mxu2 %vm79_vm0, %v17_v25 }
  0x42   :  { %246 = vmatmul.msk.f32.vlgmr.msra.gmra.mxu3 %vm79_vm0, %v19_v26  ;;  %243 = vmatmul.msk.f32.vlgmr.msra.gmra.mxu1 %vm79_vm0, %v16_v27 }
  0x49   :  { %242 = vmatmul.msk.f32.gmra.mxu0 %vm79_vm0, %v15_v28  ;;  %245 = vmatmul.msk.f32.gmra.mxu2 %vm79_vm0, %v18_v29 }
  0x4a   :  { %247 = vmatmul.msk.f32.gmra.mxu3 %vm79_vm0, %v20_v30 }
  0x62   :  { %v67_v33 = vpop.permute.xlu2 %66 }
  0x6a   :  { %v72_v39 = vpop.permute.xlu2 %71 }
  0x76   :  { %v77_v31 = vpop.permute.xlu0 %76 }
  0x7a   :  { %v52_v34 = vpop.permute.xlu1 %51 }
  0x7e   :  { %v47_v37 = vpop.permute.xlu0 %46 }
  0x82   :  { %v57_v40 = vpop.permute.xlu1 %56 }
  0x86   :  { %v62_v52 = vpop.permute.xlu0 %61 }
  0xbe   :  { %v166_v32 = vpop.f32.mrf.mxu0 }
  0xbf   :  { %v172_v42 = vpop.f32.mrf.mxu1  ;;  %v167_v44 = vadd.f32 %v166_v32, %v47_v37 }
  0xc0   :  { %v173_v49 = vadd.f32 %v172_v42, %v57_v40 }
  0xc4   :  { %v175_v35 = vpop.f32.mrf.mxu2 }
  0xc5   :  { %v181_v36 = vpop.f32.mrf.mxu3  ;;  %v176_v54 = vadd.f32 %v175_v35, %v62_v52 }
  0xc6   :  { %v169_v38 = vpop.f32.mrf.mxu0  ;;  %v182_v45 = vadd.f32 %v181_v36, %v72_v39 }
  0xc7   :  { %v170_v41 = vadd.f32 %v169_v38, %v52_v34 }
  0xc9   :  { %v188_v50 = vmax.f32 %v170_v41, %v182_v45 }
  0xcc   :  { %v178_v43 = vpop.f32.mrf.mxu2 }
  0xcd   :  { %v179_v46 = vadd.f32 %v178_v43, %v67_v33  ;;  %v184_v47 = vpop.f32.mrf.mxu3 }
  0xce   :  { %v185_v48 = vadd.f32 %v184_v47, %v77_v31 }
  0xcf   :  { %v187_v51 = vmax.f32 %v167_v44, %v179_v46 }
  0xd0   :  { %v190_v53 = vsel %vm189_vm1, %v185_v48, -inf }
  0xd1   :  { %v192_v55 = vmax.f32 %v187_v51, %v188_v50  ;;  %v191_v56 = vmax.f32 %v173_v49, %v190_v53 }
  0xd3   :  { %v193_v57 = vmax.f32 %v191_v56, %v176_v54 }
  0xd5   :  { %v194_v58 = vmax.f32 %v192_v55, %v193_v57 }
  0xd7   :  { %v195_v59 = vrot.slane %v194_v58, 4 }
  0xd9   :  { %v196_v60 = vmax.f32 %v194_v58, %v195_v59 }
  0xdb   :  { %v197_v61 = vrot.slane %v196_v60, 2 }
  0xdd   :  { %v198_v62 = vmax.f32 %v196_v60, %v197_v61 }
  0xdf   :  { %v199_v63 = vrot.slane %v198_v62, 1 }
  0xe1   :  { %v200_v0 = vmax.f32 %v198_v62, %v199_v63 }
  0xe3   :  { %v201_v1 = vsub.f32 0.0, %v200_v0 }
  0xe5   :  { %v202_v2 = vmul.f32 1.442695, %v201_v1 }
  0xe7   :  { %300 = vpow2.f32 %v202_v2 }
  0xed   :  { %v301_v3 = vpop.eup %300 }
  0xee   :  { %v204_v4 = vadd.f32 1.0, %v301_v3 }
  0xf0   :  { %302 = vrcp.f32 %v204_v4  ;;  %v216_v8 = vand.u32 2147483648, %v204_v4  ;;  %v214_v10 = vand.u32 2147483647, %v204_v4  ;;  %vm210_vm3 = vweird.f32 %v204_v4 }
  0xf2   :  { %v217_v12 = vor.u32 1.1754944e-38, %v216_v8  ;;  %vm215_vm5 = vcmp.eq.f32.partialorder %v214_v10, 8.507059e+37 }
  0xf6   :  { %v303_v5 = vpop.eup %302 }
  0xf7   :  { %v206_v6 = vmul.f32 %v303_v5, %v204_v4  ;;  %vm211_vm2 = vweird.f32 %v303_v5 }
  0xf8   :  { %vm212_vm4 = vmor %vm210_vm3, %vm211_vm2 }
  0xf9   :  { %v207_v7 = vsub.f32 1.0, %v206_v6 }
  0xfb   :  { %v208_v9 = vmul.f32 %v303_v5, %v207_v7 }
  0xfd   :  { %v209_v11 = vadd.f32 %v303_v5, %v208_v9 }
  0xff   :  { %v213_v13 = vsel %vm212_vm4, %v303_v5, %v209_v11 }
 0x100   :  { %v218_v14 = vsel %vm215_vm5, %v217_v12, %v213_v13 }
 0x101   :  { %220 = vst [vmem:[%s492_s3] sm:$0x1] %v218_v14 }

</bundles_post_ra>
